<compile_context>
chip_gen: v5e
topology: v5e:2x2
jax: 0.10.0
libtpu: 0.0.40
codegen_flags: <defaults>
</compile_context>

<pallas_src>
import jax
import jax.numpy as jnp
from jax.experimental import pallas as pl
from jax.experimental.pallas import tpu as pltpu

_LANE = 128


def _mixed_op_kernel(w_ref, wcat_ref, x_ref, o_ref):
    """One grid cell = one (batch, M-tile, channel-group).

    w_ref    : SMEM scalar-prefetch, (num_ops,) f32 raw architecture weights.
    wcat_ref : VMEM, (2*Cq, Cq) stacked folded conv weights
               [w_conv*wa + w_skip*I ; wb]  (block-invariant -> VMEM-resident).
    x_ref    : VMEM, (Cq, mt)  channel group g of x, batch b, M tile m.
    o_ref    : VMEM, (Cq, mt)  output slab (channel-shuffled layout).
    """
    g = pl.program_id(2)
    Cq = x_ref.shape[0]

    # Groups 1..k-1 are pure pass-through: after channel_shuffle they are
    # exactly the xtemp2 channels, re-interleaving is handled by out_specs.
    @pl.when(g != 0)
    def _copy():
        o_ref[...] = x_ref[...]

    # Group 0 carries the weighted mixture of the candidate ops.
    @pl.when(g == 0)
    def _mix():
        w_skip = w_ref[1]   # 'skip_connect'
        w_conv = w_ref[2]   # 1x1 conv
        w_crel = w_ref[3]   # 1x1 conv + relu
        # (w_ref[0] is 'none' -> contributes nothing.)
        need_mxu = jnp.logical_or(w_conv != 0.0, w_crel != 0.0)

        @pl.when(need_mxu)
        def _full():
            # Single MXU matmul: (2Cq, Cq) @ (Cq, mt), f32 accumulation.
            y = jnp.dot(wcat_ref[...], x_ref[...],
                        preferred_element_type=jnp.float32)
            # Top rows already carry w_conv*conv + w_skip*x (folded in the
            # wrapper); w_crel is applied OUTSIDE the relu so arbitrary-signed
            # architecture weights stay exact.
            o_ref[...] = (y[:Cq] + w_crel * jnp.maximum(y[Cq:], 0.0)
                          ).astype(o_ref.dtype)

        @pl.when(jnp.logical_not(need_mxu))
        def _skip_only():   # near-one-hot DARTS alphas: skip dead matmuls
            o_ref[...] = (w_skip * x_ref[...]).astype(o_ref.dtype)


def _vmem_capacity_bytes():
    """Physical VMEM per TensorCore; conservative v7x-sized fallback."""
    try:
        info = pltpu.get_tpu_info()
        cap = getattr(info, "vmem_capacity_bytes", None)
        if cap:
            return int(cap)
    except Exception:
        pass
    return 64 * 1024 * 1024  # v7x has 64 MiB/TC -- the most constrained case


def _pick_m_tile(Mp, bytes_per_col, budget_bytes):
    """Largest multiple-of-128 divisor of Mp whose double-buffered in+out
    blocks fit the VMEM buffer budget (floor of 128)."""
    max_mt = max(_LANE, (budget_bytes // max(bytes_per_col, 1)) // _LANE * _LANE)
    max_mt = min(max_mt, Mp)
    best = _LANE
    t = _LANE
    while t <= max_mt:
        if Mp % t == 0:
            best = t
        t += _LANE
    return best


def mixed_op_pallas(x, weights, wa, wb, k=4):
    """x: [bs, C, N, T]; weights: [num_ops] f32; wa, wb: [C//k, C//k]."""
    bs, C, N, T = x.shape
    assert C % k == 0, "hid_dim must be divisible by k"
    Cq = C // k
    itemsize = jnp.dtype(x.dtype).itemsize
    sublane = 8 * (4 // itemsize)      # 8 for f32, 16 for bf16
    assert Cq % sublane == 0, (
        f"C//k={Cq} must be a multiple of {sublane} for dtype {x.dtype} "
        f"(TPU (8,128) block constraint on the channel-group axis)")

    M = N * T
    Mp = ((M + _LANE - 1) // _LANE) * _LANE   # lane-pad so stores are unmasked

    # Free view + (rare) lane pad; no full-tensor transposes/concats in XLA.
    x3 = x.reshape(bs, C, M)
    if Mp != M:
        x3 = jnp.pad(x3, ((0, 0), (0, 0), (0, Mp - M)))

    # Fold w_skip / w_conv into the stacked conv weight (tiny Cq x Cq op).
    weights = weights.astype(jnp.float32)
    eye = jnp.eye(Cq, dtype=jnp.float32)
    wcat = jnp.concatenate(
        [weights[2] * wa.astype(jnp.float32) + weights[1] * eye,
         wb.astype(jnp.float32)], axis=0).astype(x.dtype)        # (2Cq, Cq)

    # VMEM-budget-aware tile size: 2 input bufs + 2 output bufs of (Cq, mt).
    cap = _vmem_capacity_bytes()
    buffer_budget = int(cap * 0.60)          # ~38 MiB on v7x, ~76 MiB v5e/v6e
    mt = _pick_m_tile(Mp, 4 * Cq * itemsize, buffer_budget)
    num_mt = Mp // mt

    needed = 4 * Cq * mt * itemsize + 2 * (2 * Cq) * Cq * itemsize
    vmem_limit = int(min(int(cap * 0.85), max(needed + (8 << 20), 32 << 20)))

    out = pl.pallas_call(
        _mixed_op_kernel,
        out_shape=jax.ShapeDtypeStruct((bs, Cq, k * Mp), x.dtype),
        grid_spec=pltpu.PrefetchScalarGridSpec(
            num_scalar_prefetch=1,                # architecture weights -> SMEM
            grid=(bs, num_mt, k),
            in_specs=[
                # stacked conv weights: block-invariant -> VMEM-resident
                pl.BlockSpec((2 * Cq, Cq), lambda b, m, g, w: (0, 0)),
                # batch b, channel group g, M tile m (batch dim squeezed)
                pl.BlockSpec((None, Cq, mt), lambda b, m, g, w: (b, g, m)),
            ],
            # Output written in channel-shuffled layout: group g lands at lane
            # offset g*Mp of the (bs, Cq, k*Mp) slab -> final reshape is free.
            out_specs=pl.BlockSpec(
                (None, Cq, mt), lambda b, m, g, w: (b, 0, g * num_mt + m)),
        ),
        compiler_params=pltpu.CompilerParams(
            dimension_semantics=("parallel", "parallel", "parallel"),
            vmem_limit_bytes=vmem_limit),
    )(weights, wcat, x3)

    # out[b, cq, g*Mp + m] == channel_shuffle(cat([temp1, xtemp2]), k)[b, cq*k+g, m]
    if Mp != M:
        out = out.reshape(bs, Cq, k, Mp)[:, :, :, :M]
    return out.reshape(bs, C, N, T)


def mixed_op_reference(x, weights, wa, wb, k=4):
    """Pure-JAX reference matching the PyTorch forward semantics."""
    bs, C, N, T = x.shape
    Cq = C // k
    xtemp = x[:, :Cq, :, :]
    xtemp2 = x[:, Cq:, :, :]

    def conv1x1(xx, W):  # NCHW 1x1 conv == channel matmul
        return jnp.einsum('oc,bcnt->bont', W, xx)

    op_outs = [
        jnp.zeros_like(xtemp),                 # none
        xtemp,                                 # skip_connect
        conv1x1(xtemp, wa),                    # 1x1 conv
        jnp.maximum(conv1x1(xtemp, wb), 0.0),  # 1x1 conv + relu
    ]
    temp1 = sum(w * o for w, o in zip(weights, op_outs))
    ans = jnp.concatenate([temp1, xtemp2], axis=1)
    ans = ans.reshape(bs, k, C // k, N, T)
    ans = jnp.transpose(ans, (0, 2, 1, 3, 4)).reshape(bs, C, N, T)
    return ans


if __name__ == "__main__":
    key = jax.random.PRNGKey(0)
    k1, k2, k3, k4 = jax.random.split(key, 4)

    bs, C, N, T = 2, 32, 8, 16          # x: [bsize, hid_dim, num_nodes, seq_len]
    k_groups = 4
    Cq = C // k_groups

    x = jax.random.normal(k1, (bs, C, N, T), dtype=jnp.float32)
    weights = jax.nn.softmax(jax.random.normal(k2, (4,), dtype=jnp.float32))
    wa = 0.1 * jax.random.normal(k3, (Cq, Cq), dtype=jnp.float32)
    wb = 0.1 * jax.random.normal(k4, (Cq, Cq), dtype=jnp.float32)

    # 1) Dense (softmax) architecture weights: full MXU path.
    out = jax.block_until_ready(mixed_op_pallas(x, weights, wa, wb, k=k_groups))
    ref = mixed_op_reference(x, weights, wa, wb, k=k_groups)
    assert out.shape == (bs, C, N, T)
    assert jnp.allclose(out, ref, atol=1e-5, rtol=1e-5)

    # 2) Near-one-hot DARTS weights: exercises the MXU-skip fast path.
    w_onehot = jnp.array([0.0, 1.0, 0.0, 0.0], dtype=jnp.float32)
    out2 = jax.block_until_ready(mixed_op_pallas(x, w_onehot, wa, wb, k=k_groups))
    ref2 = mixed_op_reference(x, w_onehot, wa, wb, k=k_groups)
    assert jnp.allclose(out2, ref2, atol=1e-5, rtol=1e-5)

    # 3) Arbitrary-signed weights (incl. negative relu weight): folding stays exact.
    w_signed = jnp.array([0.1, -0.3, 0.5, -0.2], dtype=jnp.float32)
    out3 = jax.block_until_ready(mixed_op_pallas(x, w_signed, wa, wb, k=k_groups))
    ref3 = mixed_op_reference(x, w_signed, wa, wb, k=k_groups)
    assert jnp.allclose(out3, ref3, atol=1e-5, rtol=1e-5)

    # 4) N*T not a multiple of 128: exercises the lane-padding path.
    xs = jax.random.normal(k1, (bs, C, 5, 6), dtype=jnp.float32)
    out4 = jax.block_until_ready(mixed_op_pallas(xs, weights, wa, wb, k=k_groups))
    ref4 = mixed_op_reference(xs, weights, wa, wb, k=k_groups)
    assert out4.shape == (bs, C, 5, 6)
    assert jnp.allclose(out4, ref4, atol=1e-5, rtol=1e-5)

    print("KERNEL_OK")
</pallas_src>

<mosaic_0001>
module attributes {stable_mosaic.version = 11 : i64} {
  func.func @_mixed_op_kernel(%arg0: i32, %arg1: i32, %arg2: i32, %arg3: memref<4xf32, #tpu.memory_space<smem>>, %arg4: memref<16x8xf32, #tpu.memory_space<vmem>>, %arg5: memref<1x8x128xf32, #tpu.memory_space<vmem>>, %arg6: memref<1x8x128xf32, #tpu.memory_space<vmem>>) attributes {dimension_semantics = [#tpu.dimension_semantics<parallel>, #tpu.dimension_semantics<parallel>, #tpu.dimension_semantics<parallel>], iteration_bounds = array<i64: 2, 1, 4>, scalar_prefetch = 1 : i64, scratch_operands = 0 : i64, tpu.core_type = #tpu.core_type<tc>, window_params = [{pipeline_mode = #tpu.pipeline_mode<synchronous>, transform_indices = @transform_0, window_bounds = array<i64: 16, 8>}, {transform_indices = @transform_1, window_bounds = array<i64: 1, 8, 128>}, {transform_indices = @transform_2, window_bounds = array<i64: 1, 8, 128>}]} {
    %c0_i32 = arith.constant 0 : i32
    %0 = arith.cmpi ne, %arg2, %c0_i32 : i32
    %1 = arith.extui %0 : i1 to i32
    %c0_i32_0 = arith.constant 0 : i32
    %2 = arith.cmpi ne, %1, %c0_i32_0 : i32
    scf.if %2 {
      %c0 = arith.constant 0 : index
      %c0_3 = arith.constant 0 : index
      %c0_4 = arith.constant 0 : index
      %6 = vector.load %arg5[%c0, %c0_3, %c0_4] : memref<1x8x128xf32, #tpu.memory_space<vmem>>, vector<1x8x128xf32>
      %7 = vector.shape_cast %6 : vector<1x8x128xf32> to vector<8x128xf32>
      %c0_5 = arith.constant 0 : index
      %c0_6 = arith.constant 0 : index
      %c0_7 = arith.constant 0 : index
      %8 = vector.load %arg6[%c0_5, %c0_6, %c0_7] : memref<1x8x128xf32, #tpu.memory_space<vmem>>, vector<1x8x128xf32>
      %9 = vector.shape_cast %8 : vector<1x8x128xf32> to vector<8x128xf32>
      %10 = vector.shape_cast %7 : vector<8x128xf32> to vector<1x8x128xf32>
      tpu.vector_store %arg6[%c0_5, %c0_6, %c0_7], %10 {strides = array<i32>} : memref<1x8x128xf32, #tpu.memory_space<vmem>>, vector<1x8x128xf32>,
    } else {
    }
    %c0_i32_1 = arith.constant 0 : i32
    %3 = arith.cmpi eq, %arg2, %c0_i32_1 : i32
    %4 = arith.extui %3 : i1 to i32
    %c0_i32_2 = arith.constant 0 : i32
    %5 = arith.cmpi ne, %4, %c0_i32_2 : i32
    scf.if %5 {
      %c1 = arith.constant 1 : index
      %6 = memref.load %arg3[%c1] : memref<4xf32, #tpu.memory_space<smem>>
      %c2 = arith.constant 2 : index
      %7 = memref.load %arg3[%c2] : memref<4xf32, #tpu.memory_space<smem>>
      %c3 = arith.constant 3 : index
      %8 = memref.load %arg3[%c3] : memref<4xf32, #tpu.memory_space<smem>>
      %cst = arith.constant 0.000000e+00 : f32
      %9 = arith.cmpf one, %7, %cst : f32
      %cst_3 = arith.constant 0.000000e+00 : f32
      %10 = arith.cmpf one, %8, %cst_3 : f32
      %11 = arith.ori %9, %10 : i1
      %12 = arith.extui %11 : i1 to i32
      %c0_i32_4 = arith.constant 0 : i32
      %13 = arith.cmpi ne, %12, %c0_i32_4 : i32
      scf.if %13 {
        %c0 = arith.constant 0 : index
        %c0_6 = arith.constant 0 : index
        %17 = vector.load %arg4[%c0, %c0_6] : memref<16x8xf32, #tpu.memory_space<vmem>>, vector<16x8xf32>
        %c0_7 = arith.constant 0 : index
        %c0_8 = arith.constant 0 : index
        %c0_9 = arith.constant 0 : index
        %18 = vector.load %arg5[%c0_7, %c0_8, %c0_9] : memref<1x8x128xf32, #tpu.memory_space<vmem>>, vector<1x8x128xf32>
        %19 = vector.shape_cast %18 : vector<1x8x128xf32> to vector<8x128xf32>
        %cst_10 = arith.constant dense<0.000000e+00> : vector<16x128xf32>
        %20 = tpu.matmul %17, %19, %cst_10 {dimension_numbers = #tpu.dot_dimension_numbers<[1], [0], [0], [1], [0, 0, 1, 1], [], []>} : vector<16x8xf32>, vector<8x128xf32>, vector<16x128xf32> -> vector<16x128xf32>
        %21 = vector.extract_strided_slice %20 {offsets = [0, 0], sizes = [8, 128], strides = [1, 1]} : vector<16x128xf32> to vector<8x128xf32>
        %22 = vector.extract_strided_slice %20 {offsets = [8, 0], sizes = [8, 128], strides = [1, 1]} : vector<16x128xf32> to vector<8x128xf32>
        %cst_11 = arith.constant 0.000000e+00 : f32
        %23 = vector.broadcast %cst_11 : f32 to vector<8x128xf32>
        %24 = arith.maximumf %22, %23 : vector<8x128xf32>
        %25 = vector.broadcast %8 : f32 to vector<8x128xf32>
        %26 = arith.mulf %25, %24 : vector<8x128xf32>
        %27 = arith.addf %21, %26 : vector<8x128xf32>
        %c0_12 = arith.constant 0 : index
        %c0_13 = arith.constant 0 : index
        %c0_14 = arith.constant 0 : index
        %28 = vector.load %arg6[%c0_12, %c0_13, %c0_14] : memref<1x8x128xf32, #tpu.memory_space<vmem>>, vector<1x8x128xf32>
        %29 = vector.shape_cast %28 : vector<1x8x128xf32> to vector<8x128xf32>
        %30 = vector.shape_cast %27 : vector<8x128xf32> to vector<1x8x128xf32>
        tpu.vector_store %arg6[%c0_12, %c0_13, %c0_14], %30 {strides = array<i32>} : memref<1x8x128xf32, #tpu.memory_space<vmem>>, vector<1x8x128xf32>,
      } else {
      }
      %true = arith.constant true
      %14 = arith.xori %11, %true : i1
      %15 = arith.extui %14 : i1 to i32
      %c0_i32_5 = arith.constant 0 : i32
      %16 = arith.cmpi ne, %15, %c0_i32_5 : i32
      scf.if %16 {
        %c0 = arith.constant 0 : index
        %c0_6 = arith.constant 0 : index
        %c0_7 = arith.constant 0 : index
        %17 = vector.load %arg5[%c0, %c0_6, %c0_7] : memref<1x8x128xf32, #tpu.memory_space<vmem>>, vector<1x8x128xf32>
        %18 = vector.shape_cast %17 : vector<1x8x128xf32> to vector<8x128xf32>
        %19 = vector.broadcast %6 : f32 to vector<8x128xf32>
        %20 = arith.mulf %19, %18 : vector<8x128xf32>
        %c0_8 = arith.constant 0 : index
        %c0_9 = arith.constant 0 : index
        %c0_10 = arith.constant 0 : index
        %21 = vector.load %arg6[%c0_8, %c0_9, %c0_10] : memref<1x8x128xf32, #tpu.memory_space<vmem>>, vector<1x8x128xf32>
        %22 = vector.shape_cast %21 : vector<1x8x128xf32> to vector<8x128xf32>
        %23 = vector.shape_cast %20 : vector<8x128xf32> to vector<1x8x128xf32>
        tpu.vector_store %arg6[%c0_8, %c0_9, %c0_10], %23 {strides = array<i32>} : memref<1x8x128xf32, #tpu.memory_space<vmem>>, vector<1x8x128xf32>,
      } else {
      }
    } else {
    }
    return
  }
  func.func @transform_0(%arg0: i32, %arg1: i32, %arg2: i32, %arg3: memref<4xf32, #tpu.memory_space<smem>>) -> (i32, i32) {
    %c0_i32 = arith.constant 0 : i32
    %c0_i32_0 = arith.constant 0 : i32
    %c0_i32_1 = arith.constant 0 : i32
    return %c0_i32, %c0_i32_0 : i32, i32
  }
  func.func @transform_1(%arg0: i32, %arg1: i32, %arg2: i32, %arg3: memref<4xf32, #tpu.memory_space<smem>>) -> (i32, i32, i32) {
    %c0_i32 = arith.constant 0 : i32
    return %arg0, %arg2, %arg1 : i32, i32, i32
  }
  func.func @transform_2(%arg0: i32, %arg1: i32, %arg2: i32, %arg3: memref<4xf32, #tpu.memory_space<smem>>) -> (i32, i32, i32) {
    %c1_i32 = arith.constant 1 : i32
    %0 = arith.muli %arg2, %c1_i32 : i32
    %1 = arith.addi %0, %arg1 : i32
    %c0_i32 = arith.constant 0 : i32
    %c0_i32_0 = arith.constant 0 : i32
    return %arg0, %c0_i32, %1 : i32, i32, i32
  }
}

</mosaic_0001>

<bundles_post_ra>
// kernel: tpu_custom_call.1
= control target key start
LH: loop header
LB: loop body
LE: loop exit
PB: predicated region body
PF: predicated region fallthrough
CT: control target
= control target key end

     0   :  { %s620_s15 = smov [#allocation3]   ;;  %s813_s0 = inlined_call_operand.vmem [shape: f32[4], index: 0, kind: input, shape index: {}]   ;;  %s814_s1 = inlined_call_operand.vmem [shape: f32[16,8], index: 1, kind: input, shape index: {}]   ;;  %s815_s2 = inlined_call_operand.hbm [shape: f32[2,32,128], index: 2, kind: input, shape index: {}]   ;;  %s816_s3 = inlined_call_operand.hbm [shape: f32[2,8,512], index: 3, kind: output, shape index: {}]  }
   0x1   :  { %s9_s14 = sshll.u32 %s813_s0, 4  ;;  %s10_s14 = int_to_ptr.vmem [resolvable:$true] %s9_s14 }
   0x2   :  { %12 = dma.vmem_to_smem %s10_s14, 16, %s620_s15, [#allocation2] }
   0x3   :  { %578 = dma.done.wait [#allocation2], 16 }
   0x4   :  { %579 = vsyncadd [#allocation2], 4294967280 }
   0x5   :  { %15 = sfence }
   0x6   :  { %16 = vsyncpa [#allocation5], 0 }
   0x7   :  { %18 = vsyncpa [#allocation5 + $0x1], 0 }
   0x8   :  { %19 = vsyncpa [#allocation6], 0 }
   0x9   :  { %21 = vsyncpa [#allocation6 + $0x1], 0  ;;  %s644_s16 = smov 0   ;;  %s646_s17 = smov 0  }
   0xa   :  { %s648_s18 = smov 0   ;;  %s650_s19 = smov 0  }
   0xb   :  { %s652_s20 = smov 0   ;;  %s654_s0 = smov 0  }
   0xc   :  { %s656_s21 = smov 0   ;;  %s658_s22 = smov 0  }
   0xd LB: > { %s374_s23 = sadd.s32 4294967295, %s618_s22   ;;  %s375_s24 = sadd.s32 4294967294, %s618_s22   ;;  %s618_s22 = sphi %s658_s22, %s27_s22   ;;  %s614_s21 = sphi %s656_s21, %s828_s21   ;;  %s610_s0 = sphi %s654_s0, %s827_s0   ;;  %s606_s20 = sphi %s652_s20, %s826_s20   ;;  %s602_s19 = sphi %s650_s19, %s825_s19   ;;  %s598_s18 = sphi %s648_s18, %s824_s18   ;;  %s594_s17 = sphi %s646_s17, %s823_s17   ;;  %s590_s16 = sphi %s644_s16, %s822_s16  }
   0xe   : > { %s39_s25 = sadd.s32 1, %s610_s0  ;;  %s46_s26 = sadd.s32 1, %s614_s21 }
   0xf   : > { %p40_p0 = scmp.ge.s32.totalorder %s39_s25, 4  ;;  %s78_s27 = sadd.s32 1, %s598_s18 }
  0x10   : > { %p85_p1 = scmp.ne.s32.totalorder %s598_s18, %s594_s17  ;;  %p86_p2 = scmp.eq.s32.totalorder %s618_s22, 0 }
  0x11   : > { %s830_s25 = smov (%p40_p0, %s39_s25), 0  ;;  %s832_s26 = smov (!%p40_p0, %s46_s26), %s614_s21 }
  0x12   : > { %s72_s28 = ssub.s32 %s610_s0, %s830_s25  ;;  %p697_p3 = por %p86_p2, %p85_p1 }
  0x13   : > { %p48_p4 = scmp.ge.s32.totalorder %s832_s26, 2  ;;  %p91_p5 = scmp.ne.s32.totalorder %s594_s17, %s590_s16 }
  0x14   : > { %p92_p6 = scmp.eq.s32.totalorder %s374_s23, 0  ;;  %p119_p7 = scmp.eq.s32.totalorder %s374_s23, 7 }
  0x15   : > { %s834_s26 = smov (%p48_p4, %s832_s26), 0  ;;  %p125_p10 = scmp.eq.s32.totalorder %s375_s24, 7 }
  0x16   : > { %p705_p8 = por %p92_p6, %p91_p5  ;;  %p709_p9 = por %p119_p7, %p85_p1 }
  0x17   : > { %s71_s5 = ssub.s32 %s614_s21, %s834_s26  ;;  %p715_p12 = por %p125_p10, %p91_p5 }
  0x18   : > { %s73_s6 = sor.u32 %s72_s28, %s71_s5  ;;  %p409_p13 = scmp.lt.s32.totalorder %s618_s22, 8 }
  0x19   : > { %p76_p11 = scmp.eq.s32.totalorder %s73_s6, 0  ;;  %s148_s8 = sand.u32 1, %s598_s18  }
  0x1a   : > { %s378_s10 = sshll.u32 %s148_s8, 3  ;;  %s379_s11 = sshll.u32 %s614_s21, 2 }
  0x1b   : > { %s722_s9 = scalar_select %p76_p11, %s598_s18, %s78_s27  }
  0x1c   : > { %s157_s12 = sadd.s32 %s610_s0, %s379_s11  ;;  %s152_s13 = scalar_lea.vmem [#allocation4], %s378_s10 }
  0x1d   : > { %s163_s14 = sshll.u32 %s152_s13, 4  ;;  %s380_s15 = sshll.u32 %s157_s12, 3  ;;  %s164_s14 = int_to_ptr.vmem [resolvable:$true] %s163_s14 }
  0x1e   : > { %s159_s28 = scalar_lea.hbm %s815_s2, %s380_s15  ;;  %p402_p0 = pnand %p409_p13, %p697_p3 }
  0x1f   : > { %s161_s5 = sshll.u32 %s159_s28, 4  ;;  %p381_p1 = scmp.ge.s32.totalorder %s618_s22, 1  ;;  %s162_s5 = int_to_ptr.hbm [resolvable:$true] %s161_s5 }
  0x20   : > { %s149_s6 = scalar_lea.sflag [#allocation5], %s148_s8  ;;  %p168_p2 = scmp.lt.s32.totalorder %s618_s22, 9 }
  0x21   : > { %404 = dma.hbm_to_vmem [thread:$0]  (!%p402_p0), %s162_s5, 128, %s164_s14, %s149_s6  }
  0x22   : > { %p169_p4 = pnand %p381_p1, %p168_p2 }
  0x23   : > { %s734_s27 = sand.u32 (!%p169_p4), 1, %s594_s17  }
  0x24   : > { %172 = sbr.rel (%p169_p4) target bundleno = 224 (0xe0), region = 28  ;;  %s382_s10 = sshll.u32 (!%p169_p4), %s734_s27, 3 }
  0x25   : > { %s175_s11 = scalar_lea.sflag (!%p169_p4), [#allocation5], %s734_s27  ;;  %s738_s12 = scalar_lea.vmem (!%p169_p4), [#allocation4], %s382_s10 }
  0x29   : > { %581 = dma.done.wait (%p705_p8), %s175_s11, 128  }
  0x2a   : > { %583 = vsyncadd (%p705_p8), %s175_s11, 4294967168  ;;  %s744_s29 = scalar_lea.vmem [#allocation7], %s382_s10  ;;  %p384_p3 = scmp.eq.s32.totalorder %s602_s19, 0 }
  0x2c   : > { %204 = sbr.rel (%p384_p3) target bundleno = 51 (0x33), region = 36 }
  0x31   : > { %v205_v0 = vld [vmem:[%s738_s12] sm:$0xff] }
  0x32   : > { %206 = vst [vmem:[%s744_s29] sm:$0xff] %v205_v0 }
  0x33 PF: > { %p385_p5 = scmp.ne.s32.totalorder %s602_s19, 0 }
  0x34   : > { %s386_s8 = sld [smem:[#allocation3 + $0x1]] (!%p385_p5) }
  0x35   : > { %210 = sbr.rel (%p385_p5) target bundleno = 207 (0xcf), region = 40  ;;  %s387_s13 = sld [smem:[#allocation3 + $0x2]] (!%p385_p5) }
  0x36   : > { %s388_s14 = sld [smem:[#allocation3 + $0x3]] (!%p385_p5) }
  0x3b   : > { %p214_p6 = scmp.ne.f32.partialorder %s387_s13, 0.0 }
  0x3c   : > { %p215_p7 = scmp.ne.f32.partialorder %s388_s14, 0.0 }
  0x3e   : > { %p750_p10 = por %p215_p7, %p214_p6 }
  0x3f   : > { %v222_v1 = vld [vmem:[%s738_s12] sm:$0xff] (%p750_p10)  ;;  %vm223_vm0 = vcmask (%p750_p10), 64512   ;;  %v254_v5 = vstv (%p750_p10), %s388_s14 }
  0x40   : > { %219 = sbr.rel (!%p750_p10) target bundleno = 198 (0xc6), region = 44  ;;  %v221_v2 = vld [vmem:[%s814_s1 + $0x8] sm:$0xff] (%p750_p10)  ;;  %v220_v3 = vld [vmem:[%s814_s1] sm:$0xff] (%p750_p10)  ;;  %396 = vmatpush.msra.mxu1 (%p750_p10), %v222_v1  ;;  %245 = vmatpush.msra.mxu0 (%p750_p10), %v222_v1 }
  0x41   : > { %390 = vmatmul.msk.f32.vlgmr.msra.gmra.mxu1 (%p750_p10), %vm223_vm0, %v221_v2  ;;  %389 = vmatmul.msk.f32.vlgmr.msra.gmra.mxu0 (%p750_p10), %vm223_vm0, %v220_v3 }
  0xbe   : > { %v250_v4 = vpop.f32.mrf.mxu1  ;;  %v247_v7 = vpop.f32.mrf.mxu0 }
  0xbf   : > { %v253_v6 = vmax.f32 %v250_v4, 0.0 }
  0xc1   : > { %v255_v8 = vmul.f32 %v254_v5, %v253_v6 }
  0xc3   : > { %v256_v9 = vadd.f32 %v255_v8, %v247_v7 }
  0xc5   : > { %257 = vst [vmem:[%s744_s29] sm:$0xff] %v256_v9 }
  0xc6 PF: > { %260 = sbr.rel (%p750_p10) target bundleno = 207 (0xcf), region = 48 }
  0xcb   : > { %v261_v10 = vld [vmem:[%s738_s12] sm:$0xff]  ;;  %v262_v11 = vstv %s386_s8 }
  0xcc   : > { %v263_v12 = vmul.f32 %v262_v11, %v261_v10 }
  0xce   : > { %264 = vst [vmem:[%s744_s29] sm:$0xff] %v263_v12 }
  0xcf PF: > { %s392_s5 = sshll.u32 %s606_s20, 2  ;;  %s281_s10 = sshll.u32 %s744_s29, 4  ;;  %s282_s10 = int_to_ptr.vmem [resolvable:$true] %s281_s10 }
  0xd0   : > { %s277_s6 = sadd.s32 %s602_s19, %s392_s5  ;;  %s266_s8 = scalar_lea.sflag [#allocation6], %s734_s27 }
  0xd1   : > { %s393_s11 = sshll.u32 %s277_s6, 3  ;;  %s538_s19 = scalar_lea.hbm %s816_s3, 64 }
  0xd2   : > { %s279_s30 = scalar_lea.hbm %s816_s3, %s393_s11 }
  0xd3   : > { %s283_s12 = sshll.u32 %s279_s30, 4  ;;  %s284_s12 = int_to_ptr.hbm [resolvable:$true] %s283_s12 }
  0xd4   : > { %s532_s15 = sshra.s32 %s284_s12, 4  ;;  %s533_s15 = int_to_ptr.hbm [resolvable:$true] %s532_s15 }
  0xd5   : > { %s534_s23 = scalar_lea.hbm %s533_s15, 8  ;;  %p539_p0 = scmp.lt.s32.totalorder %s533_s15, %s816_s3 }
  0xd6   : > { %p535_p8 = scmp.ne.s32.totalorder %s533_s15, %s534_s23  ;;  %p540_p1 = scmp.lt.s32.totalorder %s538_s19, %s534_s23 }
  0xd8   : > { %p536_p11 = pnand %p535_p8, %p709_p9  ;;  %p541_p2 = por %p540_p1, %p539_p0 }
  0xda   : > { %p537_p13 = pneg %p536_p11 }
  0xdc   : > { %p542_p4 = pnand %p541_p2, %p537_p13 }
  0xde   : > { %545 = shalt.err (!%p542_p4)
}
  0xdf   : > { %399 = dma.vmem_to_hbm [thread:$0]  (%p709_p9), %s282_s10, 128, %s284_s12, %s266_s8  }
  0xe0 PF: > { %p410_p3 = scmp.ge.s32.totalorder %s618_s22, 2  ;;  %s295_s27 = sand.u32 1, %s590_s16  }
  0xe1   : > { %s296_s5 = scalar_lea.sflag [#allocation6], %s295_s27 }
  0xe2   : > { %p406_p5 = pnand %p410_p3, %p715_p12 }
  0xe4   : > { %p407_p6 = pneg %p406_p5 }
  0xe6   : > { %585 = dma.done.wait (%p407_p6), %s296_s5, 128  }
  0xe7   : > { %587 = vsyncadd (%p407_p6), %s296_s5, 4294967168  ;;  %s27_s22 = sadd.s32 1, %s618_s22   ;;  %s822_s16 = smov %s594_s17 }
  0xe8   : > { %p24_p7 = scmp.ge.s32.totalorder %s27_s22, 10   ;;  %s823_s17 = smov %s598_s18 }
  0xe9   : > { %s824_s18 = smov %s722_s9  ;;  %s825_s19 = smov %s610_s0 }
  0xea   : > { %s826_s20 = smov %s614_s21  ;;  %s827_s0 = smov %s830_s25 }
  0xeb   : > { %s828_s21 = smov %s834_s26  ;;  %26 = sbr.rel (!%p24_p7) target bundleno = 13 (0xd), region = 89 }
  0xf0   :  { %302 = vsyncpa [#allocation5], 1 }
  0xf1   :  { %304 = vsyncpa [#allocation5 + $0x1], 1 }
  0xf2   :  { %305 = vsyncpa [#allocation6], 1 }
  0xf3   :  { %307 = vsyncpa [#allocation6 + $0x1], 1 }

</bundles_post_ra>
